<compile_context>
chip_gen: v7x
topology: tpu7x:2x2x1
jax: 0.10.0
libtpu: 0.0.40
codegen_flags: <defaults>
</compile_context>

<pallas_src>
import jax
import jax.numpy as jnp
from jax.experimental import pallas as pl
from jax.experimental.pallas import tpu as pltpu


# --------------------------------- kernel ---------------------------------- #

def inner_kernel(x_ref, wa_ref, ba_ref, wc_ref, bc_ref, out_ref):
    """One (nb, C, T) slab of the Inner block, channel-major.

    x_ref  : (nb, C, T) f32   activations (channels on sublanes, pixels on lanes)
    wa_ref : (C, C)     bf16  atten 1x1 weight     ba_ref: (C, 1) f32 bias
    wc_ref : (C, C)     bf16  conv  1x1 weight     bc_ref: (C, 1) f32 bias
    out_ref: (nb, C, T) f32
    """
    wa = wa_ref[...]
    wc = wc_ref[...]
    ba = ba_ref[...]
    bc = bc_ref[...]

    # Static unroll over the small per-step batch sub-block.
    for b in range(x_ref.shape[0]):
        x_bf = x_ref[b].astype(jnp.bfloat16)                      # (C, T)

        # att = Wa @ x + ba   (MXU, bf16 operands, f32 accumulate)
        att = jnp.dot(wa, x_bf, preferred_element_type=jnp.float32) + ba

        # z = att * sigmoid(att); sigmoid via one EUP tanh push, f32 math
        sig = 0.5 * jnp.tanh(0.5 * att) + 0.5
        z = (att * sig).astype(jnp.bfloat16)

        # x_ = Wc @ z + bc ; out = x + x_  (re-read x for the residual)
        x_ = jnp.dot(wc, z, preferred_element_type=jnp.float32) + bc
        out_ref[b] = x_ref[b] + x_


# ------------------------------ JAX wrapper -------------------------------- #

def _pick_tile_pix(hw, target=2048):
    """Pixel-tile width: full H*W when small, else a 128-multiple (pref. a divisor)."""
    if hw <= target:
        return hw                                   # full-dim block, no padding
    top = target - (target % 128)
    for cand in range(top, 127, -128):
        if hw % cand == 0:
            return cand                             # divides H*W -> no ragged block
    return top                                      # ragged last block (Pallas-masked)


def inner_forward(x_nchw, wa, ba, wc, bc, *,
                  target_tile_pix=2048, target_bytes_per_step=1 << 20):
    """Inner.forward on NCHW input via the Pallas kernel.

    x_nchw: (N, C, H, W);  wa, wc: (C, C, 1, 1) conv1x1 weights;  ba, bc: (C,).
    The residual requires in_channel == out_channel.
    """
    N, Cin, H, W = x_nchw.shape
    Cout = wa.shape[0]
    assert Cin == Cout, "Inner residual requires in_channel == out_channel"
    C = Cout
    HW = H * W

    # (N, C, H, W) -> (N, C, H*W): contiguous reshape, no transpose, no padding.
    x = x_nchw.reshape(N, C, HW).astype(jnp.float32)

    tile_pix = _pick_tile_pix(HW, target_tile_pix)
    n_tiles = pl.cdiv(HW, tile_pix)

    # Pack several images per grid step (~1 MiB of activations) to amortize the
    # ~0.35 us per-step pipeline overhead when H*W is small.
    bytes_per_img_tile = C * tile_pix * 4
    nb = max(1, min(N, target_bytes_per_step // bytes_per_img_tile, 16))
    while N % nb:                                   # keep the batch grid exact
        nb -= 1

    # Weight / bias layout: conv1x1 (Co,Ci,1,1) -> (Co,Ci) so y = W @ x.
    wa2 = wa[:, :, 0, 0].astype(jnp.bfloat16)
    wc2 = wc[:, :, 0, 0].astype(jnp.bfloat16)
    ba2 = ba.reshape(C, 1).astype(jnp.float32)      # per-channel -> sublane column
    bc2 = bc.reshape(C, 1).astype(jnp.float32)

    grid = (N // nb, n_tiles)

    out = pl.pallas_call(
        inner_kernel,
        out_shape=jax.ShapeDtypeStruct((N, C, HW), jnp.float32),
        grid_spec=pltpu.PrefetchScalarGridSpec(
            num_scalar_prefetch=0,
            grid=grid,
            in_specs=[
                # activations: one (nb, C, tile_pix) slab per grid step
                pl.BlockSpec((nb, C, tile_pix), lambda bi, ti: (bi, 0, ti)),
                # weights / biases: constant block index -> stay VMEM-resident
                pl.BlockSpec((C, C), lambda bi, ti: (0, 0)),
                pl.BlockSpec((C, 1), lambda bi, ti: (0, 0)),
                pl.BlockSpec((C, C), lambda bi, ti: (0, 0)),
                pl.BlockSpec((C, 1), lambda bi, ti: (0, 0)),
            ],
            out_specs=pl.BlockSpec((nb, C, tile_pix), lambda bi, ti: (bi, 0, ti)),
        ),
        compiler_params=pltpu.CompilerParams(
            dimension_semantics=("parallel", "parallel")),
    )(x, wa2, ba2, wc2, bc2)

    return out.reshape(N, C, H, W)


# --------------------------- pure-JAX reference ----------------------------- #

def ref_inner(x, wa, ba, wc, bc):
    def conv1(x, w, b):
        y = jax.lax.conv_general_dilated(
            x, w, (1, 1), 'VALID',
            dimension_numbers=('NCHW', 'OIHW', 'NCHW'))
        return y + b[None, :, None, None]

    att = conv1(x, wa, ba)
    z = att * jax.nn.sigmoid(att)
    return x + conv1(z, wc, bc)


# ----------------------------------- main ----------------------------------- #

if __name__ == "__main__":
    # Inner's residual (x + conv(z)) implies in_channel == out_channel.
    N, C, H, W = 2, 32, 16, 16

    key = jax.random.PRNGKey(0)
    k = jax.random.split(key, 5)

    x = jax.random.normal(k[0], (N, C, H, W), jnp.float32)
    wa = 0.1 * jax.random.normal(k[1], (C, C, 1, 1), jnp.float32)
    ba = 0.1 * jax.random.normal(k[2], (C,), jnp.float32)
    wc = 0.1 * jax.random.normal(k[3], (C, C, 1, 1), jnp.float32)
    bc = 0.1 * jax.random.normal(k[4], (C,), jnp.float32)

    out = jax.block_until_ready(inner_forward(x, wa, ba, wc, bc))
    ref = jax.block_until_ready(ref_inner(x, wa, ba, wc, bc))

    max_err = float(jnp.max(jnp.abs(out - ref)))
    assert out.shape == (N, C, H, W), out.shape
    assert max_err < 5e-2, f"mismatch vs reference: max_err={max_err}"

    print("KERNEL_OK")
</pallas_src>

<mosaic_0001>
module attributes {stable_mosaic.version = 11 : i64} {
  func.func @inner_kernel(%arg0: i32, %arg1: i32, %arg2: memref<2x32x256xf32, #tpu.memory_space<vmem>>, %arg3: memref<32x32xbf16, #tpu.memory_space<vmem>>, %arg4: memref<32x1xf32, #tpu.memory_space<vmem>>, %arg5: memref<32x32xbf16, #tpu.memory_space<vmem>>, %arg6: memref<32x1xf32, #tpu.memory_space<vmem>>, %arg7: memref<2x32x256xf32, #tpu.memory_space<vmem>>) attributes {dimension_semantics = [#tpu.dimension_semantics<parallel>, #tpu.dimension_semantics<parallel>], iteration_bounds = array<i64: 1, 1>, scalar_prefetch = 0 : i64, scratch_operands = 0 : i64, tpu.core_type = #tpu.core_type<tc>, window_params = [{transform_indices = @transform_0, window_bounds = array<i64: 2, 32, 256>}, {pipeline_mode = #tpu.pipeline_mode<synchronous>, transform_indices = @transform_1, window_bounds = array<i64: 32, 32>}, {pipeline_mode = #tpu.pipeline_mode<synchronous>, transform_indices = @transform_2, window_bounds = array<i64: 32, 1>}, {pipeline_mode = #tpu.pipeline_mode<synchronous>, transform_indices = @transform_3, window_bounds = array<i64: 32, 32>}, {pipeline_mode = #tpu.pipeline_mode<synchronous>, transform_indices = @transform_4, window_bounds = array<i64: 32, 1>}, {transform_indices = @transform_5, window_bounds = array<i64: 2, 32, 256>}]} {
    %c0 = arith.constant 0 : index
    %c0_0 = arith.constant 0 : index
    %0 = vector.load %arg3[%c0, %c0_0] : memref<32x32xbf16, #tpu.memory_space<vmem>>, vector<32x32xbf16>
    %c0_1 = arith.constant 0 : index
    %c0_2 = arith.constant 0 : index
    %1 = vector.load %arg5[%c0_1, %c0_2] : memref<32x32xbf16, #tpu.memory_space<vmem>>, vector<32x32xbf16>
    %c0_3 = arith.constant 0 : index
    %c0_4 = arith.constant 0 : index
    %2 = vector.load %arg4[%c0_3, %c0_4] : memref<32x1xf32, #tpu.memory_space<vmem>>, vector<32x1xf32>
    %c0_5 = arith.constant 0 : index
    %c0_6 = arith.constant 0 : index
    %3 = vector.load %arg6[%c0_5, %c0_6] : memref<32x1xf32, #tpu.memory_space<vmem>>, vector<32x1xf32>
    %c0_7 = arith.constant 0 : index
    %c0_8 = arith.constant 0 : index
    %c0_9 = arith.constant 0 : index
    %4 = vector.load %arg2[%c0_7, %c0_8, %c0_9] : memref<2x32x256xf32, #tpu.memory_space<vmem>>, vector<1x32x256xf32>
    %5 = vector.shape_cast %4 : vector<1x32x256xf32> to vector<32x256xf32>
    %6 = arith.truncf %5 : vector<32x256xf32> to vector<32x256xbf16>
    %cst = arith.constant dense<0.000000e+00> : vector<32x256xf32>
    %7 = tpu.matmul %0, %6, %cst {dimension_numbers = #tpu.dot_dimension_numbers<[1], [0], [0], [1], [0, 0, 1, 1], [], []>} : vector<32x32xbf16>, vector<32x256xbf16>, vector<32x256xf32> -> vector<32x256xf32>
    %8 = vector.broadcast %2 : vector<32x1xf32> to vector<32x256xf32>
    %9 = arith.addf %7, %8 : vector<32x256xf32>
    %cst_10 = arith.constant 5.000000e-01 : f32
    %10 = vector.broadcast %cst_10 : f32 to vector<32x256xf32>
    %11 = arith.mulf %10, %9 : vector<32x256xf32>
    %12 = math.tanh %11 : vector<32x256xf32>
    %cst_11 = arith.constant 5.000000e-01 : f32
    %13 = vector.broadcast %cst_11 : f32 to vector<32x256xf32>
    %14 = arith.mulf %13, %12 : vector<32x256xf32>
    %cst_12 = arith.constant 5.000000e-01 : f32
    %15 = vector.broadcast %cst_12 : f32 to vector<32x256xf32>
    %16 = arith.addf %14, %15 : vector<32x256xf32>
    %17 = arith.mulf %9, %16 : vector<32x256xf32>
    %18 = arith.truncf %17 : vector<32x256xf32> to vector<32x256xbf16>
    %cst_13 = arith.constant dense<0.000000e+00> : vector<32x256xf32>
    %19 = tpu.matmul %1, %18, %cst_13 {dimension_numbers = #tpu.dot_dimension_numbers<[1], [0], [0], [1], [0, 0, 1, 1], [], []>} : vector<32x32xbf16>, vector<32x256xbf16>, vector<32x256xf32> -> vector<32x256xf32>
    %20 = vector.broadcast %3 : vector<32x1xf32> to vector<32x256xf32>
    %21 = arith.addf %19, %20 : vector<32x256xf32>
    %c0_14 = arith.constant 0 : index
    %c0_15 = arith.constant 0 : index
    %c0_16 = arith.constant 0 : index
    %22 = vector.load %arg2[%c0_14, %c0_15, %c0_16] : memref<2x32x256xf32, #tpu.memory_space<vmem>>, vector<1x32x256xf32>
    %23 = vector.shape_cast %22 : vector<1x32x256xf32> to vector<32x256xf32>
    %24 = arith.addf %23, %21 : vector<32x256xf32>
    %c0_17 = arith.constant 0 : index
    %c0_18 = arith.constant 0 : index
    %c0_19 = arith.constant 0 : index
    %25 = vector.load %arg7[%c0_17, %c0_18, %c0_19] : memref<2x32x256xf32, #tpu.memory_space<vmem>>, vector<1x32x256xf32>
    %26 = vector.shape_cast %25 : vector<1x32x256xf32> to vector<32x256xf32>
    %27 = vector.shape_cast %24 : vector<32x256xf32> to vector<1x32x256xf32>
    tpu.vector_store %arg7[%c0_17, %c0_18, %c0_19], %27 {strides = array<i32>} : memref<2x32x256xf32, #tpu.memory_space<vmem>>, vector<1x32x256xf32>,
    %c1 = arith.constant 1 : index
    %c0_20 = arith.constant 0 : index
    %c0_21 = arith.constant 0 : index
    %28 = vector.load %arg2[%c1, %c0_20, %c0_21] : memref<2x32x256xf32, #tpu.memory_space<vmem>>, vector<1x32x256xf32>
    %29 = vector.shape_cast %28 : vector<1x32x256xf32> to vector<32x256xf32>
    %30 = arith.truncf %29 : vector<32x256xf32> to vector<32x256xbf16>
    %cst_22 = arith.constant dense<0.000000e+00> : vector<32x256xf32>
    %31 = tpu.matmul %0, %30, %cst_22 {dimension_numbers = #tpu.dot_dimension_numbers<[1], [0], [0], [1], [0, 0, 1, 1], [], []>} : vector<32x32xbf16>, vector<32x256xbf16>, vector<32x256xf32> -> vector<32x256xf32>
    %32 = vector.broadcast %2 : vector<32x1xf32> to vector<32x256xf32>
    %33 = arith.addf %31, %32 : vector<32x256xf32>
    %cst_23 = arith.constant 5.000000e-01 : f32
    %34 = vector.broadcast %cst_23 : f32 to vector<32x256xf32>
    %35 = arith.mulf %34, %33 : vector<32x256xf32>
    %36 = math.tanh %35 : vector<32x256xf32>
    %cst_24 = arith.constant 5.000000e-01 : f32
    %37 = vector.broadcast %cst_24 : f32 to vector<32x256xf32>
    %38 = arith.mulf %37, %36 : vector<32x256xf32>
    %cst_25 = arith.constant 5.000000e-01 : f32
    %39 = vector.broadcast %cst_25 : f32 to vector<32x256xf32>
    %40 = arith.addf %38, %39 : vector<32x256xf32>
    %41 = arith.mulf %33, %40 : vector<32x256xf32>
    %42 = arith.truncf %41 : vector<32x256xf32> to vector<32x256xbf16>
    %cst_26 = arith.constant dense<0.000000e+00> : vector<32x256xf32>
    %43 = tpu.matmul %1, %42, %cst_26 {dimension_numbers = #tpu.dot_dimension_numbers<[1], [0], [0], [1], [0, 0, 1, 1], [], []>} : vector<32x32xbf16>, vector<32x256xbf16>, vector<32x256xf32> -> vector<32x256xf32>
    %44 = vector.broadcast %3 : vector<32x1xf32> to vector<32x256xf32>
    %45 = arith.addf %43, %44 : vector<32x256xf32>
    %c1_27 = arith.constant 1 : index
    %c0_28 = arith.constant 0 : index
    %c0_29 = arith.constant 0 : index
    %46 = vector.load %arg2[%c1_27, %c0_28, %c0_29] : memref<2x32x256xf32, #tpu.memory_space<vmem>>, vector<1x32x256xf32>
    %47 = vector.shape_cast %46 : vector<1x32x256xf32> to vector<32x256xf32>
    %48 = arith.addf %47, %45 : vector<32x256xf32>
    %c1_30 = arith.constant 1 : index
    %c0_31 = arith.constant 0 : index
    %c0_32 = arith.constant 0 : index
    %49 = vector.load %arg7[%c1_30, %c0_31, %c0_32] : memref<2x32x256xf32, #tpu.memory_space<vmem>>, vector<1x32x256xf32>
    %50 = vector.shape_cast %49 : vector<1x32x256xf32> to vector<32x256xf32>
    %51 = vector.shape_cast %48 : vector<32x256xf32> to vector<1x32x256xf32>
    tpu.vector_store %arg7[%c1_30, %c0_31, %c0_32], %51 {strides = array<i32>} : memref<2x32x256xf32, #tpu.memory_space<vmem>>, vector<1x32x256xf32>,
    return
  }
  func.func @transform_0(%arg0: i32, %arg1: i32) -> (i32, i32, i32) {
    %c0_i32 = arith.constant 0 : i32
    %c0_i32_0 = arith.constant 0 : i32
    return %arg0, %c0_i32, %arg1 : i32, i32, i32
  }
  func.func @transform_1(%arg0: i32, %arg1: i32) -> (i32, i32) {
    %c0_i32 = arith.constant 0 : i32
    %c0_i32_0 = arith.constant 0 : i32
    %c0_i32_1 = arith.constant 0 : i32
    return %c0_i32, %c0_i32_0 : i32, i32
  }
  func.func @transform_2(%arg0: i32, %arg1: i32) -> (i32, i32) {
    %c0_i32 = arith.constant 0 : i32
    %c0_i32_0 = arith.constant 0 : i32
    %c0_i32_1 = arith.constant 0 : i32
    return %c0_i32, %c0_i32_0 : i32, i32
  }
  func.func @transform_3(%arg0: i32, %arg1: i32) -> (i32, i32) {
    %c0_i32 = arith.constant 0 : i32
    %c0_i32_0 = arith.constant 0 : i32
    %c0_i32_1 = arith.constant 0 : i32
    return %c0_i32, %c0_i32_0 : i32, i32
  }
  func.func @transform_4(%arg0: i32, %arg1: i32) -> (i32, i32) {
    %c0_i32 = arith.constant 0 : i32
    %c0_i32_0 = arith.constant 0 : i32
    %c0_i32_1 = arith.constant 0 : i32
    return %c0_i32, %c0_i32_0 : i32, i32
  }
  func.func @transform_5(%arg0: i32, %arg1: i32) -> (i32, i32, i32) {
    %c0_i32 = arith.constant 0 : i32
    %c0_i32_0 = arith.constant 0 : i32
    return %arg0, %c0_i32, %arg1 : i32, i32, i32
  }
}

</mosaic_0001>

<bundles_post_ra>
// kernel: tpu_custom_call.1
= control target key start
LH: loop header
LB: loop body
LE: loop exit
PB: predicated region body
PF: predicated region fallthrough
CT: control target
= control target key end

     0   :  { %10 = vsyncpa [#allocation3], 0  ;;  %s838_s0 = inlined_call_operand.hbm [shape: f32[2,32,256], index: 0, kind: input, shape index: {}]   ;;  %s839_s1 = inlined_call_operand.vmem [shape: bf16[32,32], index: 1, kind: input, shape index: {}]   ;;  %s840_s2 = inlined_call_operand.vmem [shape: f32[32,1], index: 2, kind: input, shape index: {}]   ;;  %s841_s3 = inlined_call_operand.vmem [shape: bf16[32,32], index: 3, kind: input, shape index: {}]   ;;  %s842_s4 = inlined_call_operand.vmem [shape: f32[32,1], index: 4, kind: input, shape index: {}]   ;;  %s843_s5 = inlined_call_operand.hbm [shape: f32[2,32,256], index: 5, kind: output, shape index: {}]  }
   0x1   :  { %11 = vsyncpa [#allocation4], 0  ;;  %s603_s18 = smov [#allocation2]   ;;  %s555_s22 = scalar_lea.hbm %s838_s0, 2048 }
   0x2   :  { %s17_s19 = sshll.u32 %s603_s18, 4  ;;  %p556_p0 = scmp.ne.s32.totalorder %s838_s0, %s555_s22  ;;  %s18_s19 = int_to_ptr.vmem [resolvable:$true] %s17_s19 }
   0x3   :  { %p559_p1 = scmp.lt.u32.totalorder %s555_s22, %s838_s0 }
   0x5   :  { %p561_p2 = pnand %p559_p1, %p556_p0 }
   0x7   :  { %564 = shalt.err (!%p561_p2)
}
   0x8   :  { %s565_s27 = scalar_lea.vmem %s18_s19, 2048  ;;  %p570_p4 = scmp.lt.s32.totalorder %s18_s19, %s18_s19 }
   0x9   :  { %p566_p3 = scmp.ne.s32.totalorder %s18_s19, %s565_s27  ;;  %p571_p5 = scmp.lt.s32.totalorder %s565_s27, %s565_s27 }
   0xb   :  { %p572_p6 = por %p571_p5, %p570_p4 }
   0xd   :  { %p573_p7 = pnand %p572_p6, %p566_p3 }
   0xf   :  { %576 = shalt.err (!%p573_p7)
}
  0x10   :  { %s604_s28 = smov 256   ;;  %s605_s29 = smov 16  }
  0x11   :  { %23 = dma.hbm_to_vmem [thread:$0]  %s838_s0, 2048, %s18_s19, [#allocation3], %s604_s28, %s604_s28, %s605_s29  }
  0x12   :  { %599 = dma.done.wait [#allocation3], 2048  }
  0x13   :  { %600 = vsyncadd [#allocation3], 4294965248  ;;  %v606_v0 = vmov 0   ;;  %v657_v1 = vld [vmem:[#allocation2 + $0x8] sm:$0xff]  ;;  %v659_v2 = vld [vmem:[#allocation2 + $0x18] sm:$0xff]  ;;  %vm94_vm0 = vcmask 261120  }
  0x14   :  { %133 = vmatprep.mubr.bf16.mxu0 %v606_v0  ;;  %517 = vset.pattern.permute.xlu0 %v606_v0  ;;  %v661_v3 = vld [vmem:[#allocation2] sm:$0xff]  ;;  %v61_v4 = vpack.c.bf16 %v659_v2, %v657_v1  ;;  %v665_v5 = vld [vmem:[#allocation2 + $0x10] sm:$0xff]  ;;  %v667_v6 = vld [vmem:[#allocation2 + $0x28] sm:$0xff] }
  0x15   :  { %518 = vset.pattern.permute.xlu1 %v606_v0  ;;  %266 = vmatprep.mubr.bf16.mxu1 %v606_v0  ;;  %v669_v7 = vld [vmem:[#allocation2 + $0x38] sm:$0xff]  ;;  %v60_v8 = vpack.c.bf16 %v665_v5, %v661_v3  ;;  %v675_v10 = vld [vmem:[#allocation2 + $0x20] sm:$0xff]  ;;  %v677_v11 = vld [vmem:[#allocation2 + $0x30] sm:$0xff] }
  0x16   :  { %v63_v9 = vpack.c.bf16 %v669_v7, %v667_v6  ;;  %101 = vmatprep.subr.bf16.mxu0 %v61_v4  ;;  %v679_v12 = vld [vmem:[#allocation2 + $0x48] sm:$0xff]  ;;  %v62_v13 = vpack.c.bf16 %v677_v11, %v675_v10  ;;  %v683_v14 = vld [vmem:[#allocation2 + $0x58] sm:$0xff]  ;;  %v685_v15 = vld [vmem:[#allocation2 + $0x40] sm:$0xff] }
  0x17   :  { %102 = vmatpush1.bf16.msra.mxu0 %v60_v8  ;;  %v313_v16 = vpack.c.bf16 %v683_v14, %v679_v12  ;;  %v689_v17 = vld [vmem:[#allocation2 + $0x50] sm:$0xff]  ;;  %v691_v18 = vld [vmem:[#allocation2 + $0x68] sm:$0xff]  ;;  %v693_v19 = vld [vmem:[#allocation2 + $0x78] sm:$0xff] }
  0x18   :  { %103 = vmatprep.subr.bf16.mxu0 %v63_v9  ;;  %v519_v20 = vld [vmem:[%s839_s1] sm:$0xff]   ;;  %v46_v22 = vld [vmem:[%s840_s2 + $0x10] sm:$0xff]  ;;  %v312_v23 = vpack.c.bf16 %v689_v17, %v685_v15  ;;  %v315_v24 = vpack.c.bf16 %v693_v19, %v691_v18  ;;  %v45_v27 = vld [vmem:[%s840_s2 + $0x8] sm:$0xff] }
  0x19   :  { %v44_v21 = vld [vmem:[%s840_s2] sm:$0xff]  ;;  %v710_v26 = vld [vmem:[#allocation2 + $0x70] sm:$0xff]  ;;  %76 = vperm.xlu1 %518, %v46_v22   ;;  %v47_v28 = vld [vmem:[%s840_s2 + $0x18] sm:$0xff] }
  0x1a   :  { %66 = vperm.xlu0 %517, %v44_v21   ;;  %v708_v25 = vld [vmem:[#allocation2 + $0x60] sm:$0xff]  ;;  %v520_v31 = vld [vmem:[%s839_s1 + $0x8] sm:$0xff]   ;;  %v50_v33 = vld [vmem:[%s842_s4 + $0x10] sm:$0xff] }
  0x1b   :  { %104 = vmatpush1.bf16.msra.mxu0 %v62_v13  ;;  %v314_v29 = vpack.c.bf16 %v710_v26, %v708_v25  ;;  %v48_v30 = vld [vmem:[%s842_s4] sm:$0xff]  ;;  %v49_v32 = vld [vmem:[%s842_s4 + $0x8] sm:$0xff]  ;;  %v51_v34 = vld [vmem:[%s842_s4 + $0x18] sm:$0xff] }
  0x1c   :  { %316 = vmatprep.subr.bf16.mxu0 %v313_v16 }
  0x1d   :  { %81 = vperm.xlu1 %518, %v47_v28  }
  0x1e   :  { %502 = vmatmul.mubr.msk.bf16.vlgmr.msra.gmra.mrb[0].mxu0 %vm94_vm0, %v519_v20  ;;  %71 = vperm.xlu0 %517, %v45_v27  }
  0x1f   :  { %317 = vmatpush1.bf16.msra.mxu0 %v312_v23  ;;  %143 = vmatprep.mubr.bf16.mxu0 %v606_v0 }
  0x20   :  { %318 = vmatprep.subr.bf16.mxu0 %v315_v24 }
  0x21   :  { %205 = vperm.xlu1 %518, %v49_v32  }
  0x22   :  { %200 = vperm.xlu0 %517, %v48_v30  }
  0x23   :  { %319 = vmatpush1.bf16.msra.mxu0 %v314_v29 }
  0x25   :  { %215 = vperm.xlu1 %518, %v51_v34  }
  0x26   :  { %503 = vmatmul.mubr.msk.bf16.gmra.mrb[4].mxu0 %vm94_vm0, %v520_v31  ;;  %210 = vperm.xlu0 %517, %v50_v33  }
  0x27   :  { %348 = vmatprep.mubr.bf16.mxu0 %v606_v0 }
  0x2e   :  { %508 = vmatmul.mubr.msk.bf16.vlgmr.msra.gmra.mrb[8].mxu0 %vm94_vm0, %v519_v20 }
  0x2f   :  { %358 = vmatprep.mubr.bf16.mxu0 %v606_v0 }
  0x36   :  { %509 = vmatmul.mubr.msk.bf16.gmra.mrb[12].mxu0 %vm94_vm0, %v520_v31 }
  0x98   :  { %v742_v45 = vpop.permute.xlu1 %76 }
  0x99   :  { %v67_v35 = vpop.permute.xlu0 %66 }
  0x9c   :  { %v747_v53 = vpop.permute.xlu1 %81 }
  0x9d   :  { %v72_v39 = vpop.permute.xlu0 %71 }
  0xf1   :  { %v135_v36 = vpop.f32.mrb[0].mxu0 }
  0xf2   :  { %v136_v37 = vadd.f32 %v135_v36, %v67_v35  ;;  %v137_v38 = vpop.f32.mrb[1].mxu0 }
  0xf3   :  { %v138_v40 = vadd.f32 %v137_v38, %v67_v35  ;;  %v139_v41 = vpop.f32.mrb[2].mxu0 }
  0xf4   :  { %v154_v42 = vmul.f32 0.5, %v136_v37  ;;  %v140_v43 = vadd.f32 %v139_v41, %v72_v39  ;;  %v141_v44 = vpop.f32.mrb[3].mxu0 }
  0xf5   :  { %v155_v46 = vmul.f32 0.5, %v138_v40  ;;  %v142_v47 = vadd.f32 %v141_v44, %v72_v39 }
  0xf6   :  { %523 = vtanh.f32 %v154_v42  ;;  %v156_v48 = vmul.f32 0.5, %v140_v43 }
  0xf7   :  { %525 = vtanh.f32 %v155_v46  ;;  %v157_v49 = vmul.f32 0.5, %v142_v47 }
  0xf8   :  { %527 = vtanh.f32 %v156_v48 }
  0xf9   :  { %529 = vtanh.f32 %v157_v49  ;;  %v145_v50 = vpop.f32.mrb[4].mxu0 }
  0xfa   :  { %v745_v51 = vadd.f32 %v145_v50, %v742_v45  ;;  %v147_v52 = vpop.f32.mrb[5].mxu0 }
  0xfb   :  { %v750_v54 = vadd.f32 %v147_v52, %v742_v45  ;;  %v149_v55 = vpop.f32.mrb[6].mxu0 }
  0xfc   :  { %v158_v56 = vmul.f32 0.5, %v745_v51  ;;  %v754_v57 = vadd.f32 %v149_v55, %v747_v53  ;;  %v151_v58 = vpop.f32.mrb[7].mxu0 }
  0xfd   :  { %v159_v59 = vmul.f32 0.5, %v750_v54  ;;  %v758_v60 = vadd.f32 %v151_v58, %v747_v53 }
  0xfe   :  { %531 = vtanh.f32 %v158_v56  ;;  %v160_v61 = vmul.f32 0.5, %v754_v57 }
  0xff   :  { %533 = vtanh.f32 %v159_v59  ;;  %v161_v62 = vmul.f32 0.5, %v758_v60 }
 0x100   :  { %v524_v63 = vpop.eup %523  ;;  %535 = vtanh.f32 %v160_v61 }
 0x101   :  { %v526_v4 = vpop.eup %525  ;;  %v170_v8 = vmul.f32 0.5, %v524_v63  ;;  %537 = vtanh.f32 %v161_v62  ;;  %v350_v9 = vpop.f32.mrb[8].mxu0 }
 0x102   :  { %v528_v13 = vpop.eup %527  ;;  %v762_v16 = vadd.f32 %v350_v9, %v67_v35  ;;  %v352_v20 = vpop.f32.mrb[9].mxu0  ;;  %v171_v21 = vmul.f32 0.5, %v526_v4 }
 0x103   :  { %v530_v22 = vpop.eup %529  ;;  %v178_v23 = vadd.f32 0.5, %v170_v8  ;;  %v172_v24 = vmul.f32 0.5, %v528_v13  ;;  %v764_v27 = vadd.f32 %v352_v20, %v67_v35  ;;  %v354_v28 = vpop.f32.mrb[10].mxu0 }
 0x104   :  { %v369_v29 = vmul.f32 0.5, %v762_v16  ;;  %v767_v30 = vadd.f32 %v354_v28, %v72_v39  ;;  %v356_v31 = vpop.f32.mrb[11].mxu0  ;;  %v173_v32 = vmul.f32 0.5, %v530_v22  ;;  %v179_v33 = vadd.f32 0.5, %v171_v21 }
 0x105   :  { %v180_v34 = vadd.f32 0.5, %v172_v24  ;;  %v370_v36 = vmul.f32 0.5, %v764_v27  ;;  %v770_v38 = vadd.f32 %v356_v31, %v72_v39  ;;  %v186_v44 = vmul.f32 %v178_v23, %v136_v37 }
 0x106   :  { %539 = vtanh.f32 %v369_v29  ;;  %v371_v41 = vmul.f32 0.5, %v767_v30  ;;  %v181_v42 = vadd.f32 0.5, %v173_v32  ;;  %v187_v49 = vmul.f32 %v179_v33, %v138_v40 }
 0x107   :  { %v188_v35 = vmul.f32 %v180_v34, %v140_v43  ;;  %541 = vtanh.f32 %v370_v36  ;;  %v372_v46 = vmul.f32 0.5, %v770_v38 }
 0x108   :  { %v532_v48 = vpop.eup %531  ;;  %543 = vtanh.f32 %v371_v41  ;;  %v189_v50 = vmul.f32 %v181_v42, %v142_v47 }
 0x109   :  { %v534_v52 = vpop.eup %533  ;;  %v174_v55 = vmul.f32 0.5, %v532_v48  ;;  %545 = vtanh.f32 %v372_v46  ;;  %v360_v56 = vpop.f32.mrb[12].mxu0  ;;  %v194_v58 = vpack.c.bf16 %v188_v35, %v186_v44 }
 0x10a   :  { %v536_v39 = vpop.eup %535  ;;  %v175_v59 = vmul.f32 0.5, %v534_v52  ;;  %v775_v61 = vadd.f32 %v360_v56, %v742_v45  ;;  %v362_v62 = vpop.f32.mrb[13].mxu0  ;;  %v195_v37 = vpack.c.bf16 %v189_v50, %v187_v49 }
 0x10b   :  { %v538_v43 = vpop.eup %537  ;;  %v182_v63 = vadd.f32 0.5, %v174_v55  ;;  %v176_v4 = vmul.f32 0.5, %v536_v39  ;;  %v778_v8 = vadd.f32 %v362_v62, %v742_v45  ;;  %v364_v40 = vpop.f32.mrb[14].mxu0 }
 0x10c   :  { %v183_v47 = vadd.f32 0.5, %v175_v59  ;;  %v177_v9 = vmul.f32 0.5, %v538_v43  ;;  %v373_v13 = vmul.f32 0.5, %v775_v61  ;;  %v365_v20 = vadd.f32 %v364_v40, %v747_v53  ;;  %234 = vmatprep.subr.bf16.mxu1 %v195_v37  ;;  %v366_v21 = vpop.f32.mrb[15].mxu0 }
 0x10d   :  { %v184_v22 = vadd.f32 0.5, %v176_v4  ;;  %v374_v23 = vmul.f32 0.5, %v778_v8  ;;  %v367_v24 = vadd.f32 %v366_v21, %v747_v53  ;;  %235 = vmatpush1.bf16.msra.mxu1 %v194_v58  ;;  %v190_v45 = vmul.f32 %v182_v63, %v745_v51 }
 0x10e   :  { %v185_v28 = vadd.f32 0.5, %v177_v9  ;;  %547 = vtanh.f32 %v373_v13  ;;  %v375_v29 = vmul.f32 0.5, %v365_v20  ;;  %v191_v34 = vmul.f32 %v183_v47, %v750_v54  ;;  %v521_v54 = vld [vmem:[%s841_s3] sm:$0xff]  }
 0x10f   :  { %v192_v31 = vmul.f32 %v184_v22, %v754_v57  ;;  %549 = vtanh.f32 %v374_v23  ;;  %v376_v32 = vmul.f32 0.5, %v367_v24 }
 0x110   :  { %v540_v33 = vpop.eup %539  ;;  %v193_v36 = vmul.f32 %v185_v28, %v758_v60  ;;  %551 = vtanh.f32 %v375_v29 }
 0x111   :  { %v542_v41 = vpop.eup %541  ;;  %v385_v42 = vmul.f32 0.5, %v540_v33  ;;  %553 = vtanh.f32 %v376_v32  ;;  %v196_v53 = vpack.c.bf16 %v192_v31, %v190_v45  ;;  %v201_v32 = vpop.permute.xlu0 %200 }
 0x112   :  { %v544_v44 = vpop.eup %543  ;;  %v386_v35 = vmul.f32 0.5, %v542_v41  ;;  %v197_v46 = vpack.c.bf16 %v193_v36, %v191_v34 }
 0x113   :  { %v546_v48 = vpop.eup %545  ;;  %v393_v49 = vadd.f32 0.5, %v385_v42  ;;  %v387_v51 = vmul.f32 0.5, %v544_v44 }
 0x114   :  { %v394_v50 = vadd.f32 0.5, %v386_v35  ;;  %v388_v57 = vmul.f32 0.5, %v546_v48  ;;  %236 = vmatprep.subr.bf16.mxu1 %v197_v46 }
 0x115   :  { %v395_v52 = vadd.f32 0.5, %v387_v51  ;;  %237 = vmatpush1.bf16.msra.mxu1 %v196_v53  ;;  %v401_v55 = vmul.f32 %v393_v49, %v762_v16  ;;  %v211_v46 = vpop.permute.xlu0 %210 }
 0x116   :  { %v396_v60 = vadd.f32 0.5, %v388_v57  ;;  %v402_v39 = vmul.f32 %v394_v50, %v764_v27  ;;  %v522_v27 = vld [vmem:[%s841_s3 + $0x8] sm:$0xff]   ;;  %s607_s3 = smov [#allocation5]  }
 0x117   :  { %v403_v56 = vmul.f32 %v395_v52, %v767_v30  ;;  %s488_s27 = sshll.u32 %s607_s3, 4  ;;  %s489_s27 = int_to_ptr.vmem [resolvable:$true] %s488_s27 }
 0x118   :  { %v548_v58 = vpop.eup %547  ;;  %v404_v59 = vmul.f32 %v396_v60, %v770_v38  ;;  %506 = vmatmul.mubr.msk.bf16.vlgmr.msra.gmra.mrb[0].mxu1 %vm94_vm0, %v521_v54  ;;  %s577_s30 = scalar_lea.vmem %s489_s27, 2048  ;;  %p582_p9 = scmp.lt.s32.totalorder %s489_s27, %s489_s27 }
 0x119   :  { %v550_v62 = vpop.eup %549  ;;  %v409_v37 = vpack.c.bf16 %v403_v56, %v401_v55  ;;  %v389_v43 = vmul.f32 0.5, %v548_v58  ;;  %276 = vmatprep.mubr.bf16.mxu1 %v606_v0  ;;  %p578_p8 = scmp.ne.s32.totalorder %s489_s27, %s577_s30  ;;  %p583_p10 = scmp.lt.s32.totalorder %s577_s30, %s577_s30 }
 0x11a   :  { %v552_v63 = vpop.eup %551  ;;  %v390_v4 = vmul.f32 0.5, %v550_v62  ;;  %v410_v40 = vpack.c.bf16 %v404_v59, %v402_v39 }
 0x11b   :  { %v554_v47 = vpop.eup %553  ;;  %v397_v9 = vadd.f32 0.5, %v389_v43  ;;  %v391_v16 = vmul.f32 0.5, %v552_v63  ;;  %p584_p11 = por %p583_p10, %p582_p9 }
 0x11c   :  { %v398_v13 = vadd.f32 0.5, %v390_v4  ;;  %v392_v30 = vmul.f32 0.5, %v554_v47  ;;  %413 = vmatprep.subr.bf16.mxu1 %v410_v40 }
 0x11d   :  { %v399_v38 = vadd.f32 0.5, %v391_v16  ;;  %414 = vmatpush1.bf16.msra.mxu1 %v409_v37  ;;  %v405_v22 = vmul.f32 %v397_v9, %v775_v61  ;;  %p585_p12 = pnand %p584_p11, %p578_p8 }
 0x11e   :  { %v400_v21 = vadd.f32 0.5, %v392_v30  ;;  %v406_v28 = vmul.f32 %v398_v13, %v778_v8  ;;  %v206_v8 = vpop.permute.xlu1 %205 }
 0x11f   :  { %v407_v23 = vmul.f32 %v399_v38, %v365_v20 }
 0x120   :  { %v408_v29 = vmul.f32 %v400_v21, %v367_v24  ;;  %507 = vmatmul.mubr.msk.bf16.gmra.mrb[4].mxu1 %vm94_vm0, %v522_v27 }
 0x121   :  { %v411_v45 = vpack.c.bf16 %v407_v23, %v405_v22  ;;  %445 = vmatprep.mubr.bf16.mxu1 %v606_v0 }
 0x122   :  { %v412_v31 = vpack.c.bf16 %v408_v29, %v406_v28  ;;  %v216_v50 = vpop.permute.xlu1 %215 }
 0x124   :  { %415 = vmatprep.subr.bf16.mxu1 %v412_v31 }
 0x125   :  { %416 = vmatpush1.bf16.msra.mxu1 %v411_v45 }
 0x128   :  { %510 = vmatmul.mubr.msk.bf16.vlgmr.msra.gmra.mrb[8].mxu1 %vm94_vm0, %v521_v54 }
 0x129   :  { %455 = vmatprep.mubr.bf16.mxu1 %v606_v0 }
 0x130   :  { %511 = vmatmul.mubr.msk.bf16.gmra.mrb[12].mxu1 %vm94_vm0, %v522_v27 }
 0x1eb   :  { %v268_v61 = vpop.f32.mrb[0].mxu1 }
 0x1ec   :  { %v269_v20 = vadd.f32 %v268_v61, %v201_v32  ;;  %v270_v33 = vpop.f32.mrb[1].mxu1 }
 0x1ed   :  { %v271_v24 = vadd.f32 %v270_v33, %v201_v32  ;;  %v272_v34 = vpop.f32.mrb[2].mxu1 }
 0x1ee   :  { %v287_v36 = vadd.f32 %v269_v20, %v661_v3  ;;  %v273_v41 = vadd.f32 %v272_v34, %v206_v8  ;;  %v274_v42 = vpop.f32.mrb[3].mxu1 }
 0x1ef   :  { %v288_v53 = vadd.f32 %v271_v24, %v657_v1  ;;  %v275_v44 = vadd.f32 %v274_v42, %v206_v8 }
 0x1f0   :  { %295 = vst [vmem:[#allocation5] sm:$0xff] %v287_v36  ;;  %v289_v35 = vadd.f32 %v273_v41, %v665_v5 }
 0x1f1   :  { %296 = vst [vmem:[#allocation5 + $0x8] sm:$0xff] %v288_v53  ;;  %v290_v0 = vadd.f32 %v275_v44, %v659_v2 }
 0x1f2   :  { %297 = vst [vmem:[#allocation5 + $0x10] sm:$0xff] %v289_v35 }
 0x1f3   :  { %298 = vst [vmem:[#allocation5 + $0x18] sm:$0xff] %v290_v0  ;;  %v278_v48 = vpop.f32.mrb[4].mxu1 }
 0x1f4   :  { %v279_v49 = vadd.f32 %v278_v48, %v211_v46  ;;  %v280_v51 = vpop.f32.mrb[5].mxu1 }
 0x1f5   :  { %v281_v57 = vadd.f32 %v280_v51, %v211_v46  ;;  %v282_v3 = vpop.f32.mrb[6].mxu1 }
 0x1f6   :  { %v291_v54 = vadd.f32 %v279_v49, %v675_v10  ;;  %v283_v52 = vadd.f32 %v282_v3, %v216_v50  ;;  %v284_v1 = vpop.f32.mrb[7].mxu1 }
 0x1f7   :  { %v292_v60 = vadd.f32 %v281_v57, %v667_v6  ;;  %v285_v55 = vadd.f32 %v284_v1, %v216_v50 }
 0x1f8   :  { %299 = vst [vmem:[#allocation5 + $0x20] sm:$0xff] %v291_v54  ;;  %v293_v5 = vadd.f32 %v283_v52, %v677_v11 }
 0x1f9   :  { %300 = vst [vmem:[#allocation5 + $0x28] sm:$0xff] %v292_v60  ;;  %v294_v2 = vadd.f32 %v285_v55, %v669_v7 }
 0x1fa   :  { %301 = vst [vmem:[#allocation5 + $0x30] sm:$0xff] %v293_v5 }
 0x1fb   :  { %302 = vst [vmem:[#allocation5 + $0x38] sm:$0xff] %v294_v2  ;;  %v447_v56 = vpop.f32.mrb[8].mxu1 }
 0x1fc   :  { %v448_v58 = vadd.f32 %v447_v56, %v201_v32  ;;  %v449_v39 = vpop.f32.mrb[9].mxu1 }
 0x1fd   :  { %v450_v59 = vadd.f32 %v449_v39, %v201_v32  ;;  %v451_v62 = vpop.f32.mrb[10].mxu1 }
 0x1fe   :  { %v466_v10 = vadd.f32 %v448_v58, %v685_v15  ;;  %v452_v37 = vadd.f32 %v451_v62, %v206_v8  ;;  %v453_v43 = vpop.f32.mrb[11].mxu1 }
 0x1ff   :  { %v467_v6 = vadd.f32 %v450_v59, %v679_v12  ;;  %v454_v63 = vadd.f32 %v453_v43, %v206_v8 }
 0x200   :  { %475 = vst [vmem:[#allocation5 + $0x40] sm:$0xff] %v466_v10  ;;  %v468_v11 = vadd.f32 %v452_v37, %v689_v17 }
 0x201   :  { %476 = vst [vmem:[#allocation5 + $0x48] sm:$0xff] %v467_v6  ;;  %v469_v7 = vadd.f32 %v454_v63, %v683_v14 }
 0x202   :  { %477 = vst [vmem:[#allocation5 + $0x50] sm:$0xff] %v468_v11 }
 0x203   :  { %478 = vst [vmem:[#allocation5 + $0x58] sm:$0xff] %v469_v7  ;;  %v457_v4 = vpop.f32.mrb[12].mxu1 }
 0x204   :  { %v458_v40 = vadd.f32 %v457_v4, %v211_v46  ;;  %v459_v47 = vpop.f32.mrb[13].mxu1 }
 0x205   :  { %v460_v9 = vadd.f32 %v459_v47, %v211_v46  ;;  %v461_v16 = vpop.f32.mrb[14].mxu1 }
 0x206   :  { %v470_v15 = vadd.f32 %v458_v40, %v708_v25  ;;  %v462_v13 = vadd.f32 %v461_v16, %v216_v50  ;;  %v463_v30 = vpop.f32.mrb[15].mxu1 }
 0x207   :  { %v471_v12 = vadd.f32 %v460_v9, %v691_v18  ;;  %v464_v27 = vadd.f32 %v463_v30, %v216_v50 }
 0x208   :  { %479 = vst [vmem:[#allocation5 + $0x60] sm:$0xff] %v470_v15  ;;  %v472_v17 = vadd.f32 %v462_v13, %v710_v26 }
 0x209   :  { %480 = vst [vmem:[#allocation5 + $0x68] sm:$0xff] %v471_v12  ;;  %v473_v14 = vadd.f32 %v464_v27, %v693_v19 }
 0x20a   :  { %481 = vst [vmem:[#allocation5 + $0x70] sm:$0xff] %v472_v17 }
 0x20b   :  { %482 = vst [vmem:[#allocation5 + $0x78] sm:$0xff] %v473_v14 }
 0x20c   :  { %588 = shalt.err (!%p585_p12)
}
 0x20d   :  { %s589_s7 = scalar_lea.hbm %s843_s5, 2048 }
 0x20e   :  { %p590_p13 = scmp.ne.s32.totalorder %s843_s5, %s589_s7  ;;  %p593_p0 = scmp.lt.u32.totalorder %s589_s7, %s843_s5 }
 0x210   :  { %p595_p1 = pnand %p593_p0, %p590_p13 }
 0x212   :  { %598 = shalt.err (!%p595_p1)
}
 0x213   :  { %494 = dma.vmem_to_hbm [thread:$0]  %s489_s27, 2048, %s843_s5, [#allocation4], %s604_s28, %s604_s28, %s605_s29  }
 0x214   :  { %601 = dma.done.wait [#allocation4], 2048  }
 0x215   :  { %602 = vsyncadd [#allocation4], 4294965248 }
 0x216   :  { %498 = vsyncpa [#allocation3], 1 }
 0x217   :  { %499 = vsyncpa [#allocation4], 1 }

</bundles_post_ra>
